<compile_context>
chip_gen: v5e
topology: v5e:2x2
jax: 0.10.0
libtpu: 0.0.40
codegen_flags: <defaults>
</compile_context>

<pallas_src>
import functools

import jax
import jax.numpy as jnp
from jax.experimental import pallas as pl
from jax.experimental.pallas import tpu as pltpu


def _round_up(a, b):
    return (a + b - 1) // b * b


def _pick_tile(M, tile_m):
    """Pick the M tile.  Prefer the largest multiple-of-8 TM <= tile_m that
    divides M exactly (no ragged tail, no padding); if only degenerate
    divisors exist, fall back to a ragged cdiv grid (Pallas pads the OOB reads
    of the final block and masks its OOB writes)."""
    cap = max(8, (min(int(tile_m), _round_up(M, 8)) // 8) * 8)
    floor = max(8, cap // 4)
    cand = cap
    while cand >= floor:
        if M % cand == 0:
            return cand, M // cand           # exact grid, no ragged tail
        cand -= 8
    return cap, pl.cdiv(M, cap)              # ragged last block


def _patch_embed_kernel_norm(x_ref, w_ref, b_ref, g_ref, beta_ref, o_ref, *, eps):
    # x_ref: (TM, K) streamed patch tile    w_ref: (K, N) resident weight
    # b_ref/g_ref/beta_ref: (1, N) resident vectors
    y = jnp.dot(x_ref[...], w_ref[...], preferred_element_type=jnp.float32)
    y = y + b_ref[...].astype(jnp.float32)
    # One-pass LayerNorm statistics (sum / sum-of-squares), clamped variance.
    n = y.shape[-1]
    s1 = jnp.sum(y, axis=-1, keepdims=True)
    s2 = jnp.sum(y * y, axis=-1, keepdims=True)
    mean = s1 * (1.0 / n)
    var = jnp.maximum(s2 * (1.0 / n) - mean * mean, 0.0)   # guard f32 cancellation
    inv = jax.lax.rsqrt(var + eps)
    y = (y - mean) * inv
    y = y * g_ref[...].astype(jnp.float32) + beta_ref[...].astype(jnp.float32)
    o_ref[...] = y.astype(o_ref.dtype)


def _patch_embed_kernel_nonorm(x_ref, w_ref, b_ref, o_ref):
    y = jnp.dot(x_ref[...], w_ref[...], preferred_element_type=jnp.float32)
    y = y + b_ref[...].astype(jnp.float32)
    o_ref[...] = y.astype(o_ref.dtype)


def patch_embed(x, conv_weight, conv_bias, ln_gamma=None, ln_beta=None,
                patch_size=4, eps=1e-5, tile_m=2048):
    """PatchEmbed forward.

    x:           (B, C, H, W)  NCHW, like PyTorch
    conv_weight: (embed_dim, C, ph, pw)
    conv_bias:   (embed_dim,)
    ln_gamma/ln_beta: (embed_dim,) or None  (norm_layer=None case)

    Returns (B, num_patches, embed_dim).
    """
    B, C, H, W = x.shape
    ph = pw = patch_size
    assert H % ph == 0 and W % pw == 0
    Ho, Wo = H // ph, W // pw
    embed_dim = conv_weight.shape[0]
    K = C * ph * pw
    N = embed_dim

    # Patchify: one fused XLA transpose pass (see header for why this is not
    # folded into the kernel).  Patch flattened in (C, ph, pw) order to match
    # the PyTorch Conv2d weight layout (out, in, kh, kw).
    patches = x.reshape(B, C, Ho, ph, Wo, pw)
    patches = patches.transpose(0, 2, 4, 1, 3, 5)            # (B, Ho, Wo, C, ph, pw)
    patches = patches.reshape(B * Ho * Wo, K)                 # (M, K)

    # Resident operands.  Weight follows the activation dtype (native bf16 MXU
    # path when the model runs bf16); bias/gamma/beta stay f32.
    w2d = conv_weight.reshape(embed_dim, K).T.astype(x.dtype)  # (K, N)
    b2d = conv_bias.reshape(1, N).astype(jnp.float32)

    M = patches.shape[0]
    TM, steps = _pick_tile(M, tile_m)
    grid = (steps,)

    use_norm = ln_gamma is not None

    x_spec = pl.BlockSpec((TM, K), lambda i: (i, 0))     # streamed, double-buffered
    w_spec = pl.BlockSpec((K, N), lambda i: (0, 0))      # VMEM-resident across steps
    v_spec = pl.BlockSpec((1, N), lambda i: (0, 0))      # resident vectors
    out_spec = pl.BlockSpec((TM, N), lambda i: (i, 0))
    out_shape = jax.ShapeDtypeStruct((M, N), x.dtype)

    compiler_params = pltpu.CompilerParams(
        dimension_semantics=("parallel",),               # M steps are independent
        vmem_limit_bytes=32 * 1024 * 1024,               # covers v5e's 16 MiB default
    )

    if use_norm:
        g2d = ln_gamma.reshape(1, N).astype(jnp.float32)
        beta2d = ln_beta.reshape(1, N).astype(jnp.float32)
        kernel = functools.partial(_patch_embed_kernel_norm, eps=eps)
        in_specs = [x_spec, w_spec, v_spec, v_spec, v_spec]
        args = (patches, w2d, b2d, g2d, beta2d)
    else:
        kernel = _patch_embed_kernel_nonorm
        in_specs = [x_spec, w_spec, v_spec]
        args = (patches, w2d, b2d)

    out = pl.pallas_call(
        kernel,
        out_shape=out_shape,
        grid=grid,
        in_specs=in_specs,
        out_specs=out_spec,
        compiler_params=compiler_params,
    )(*args)

    return out.reshape(B, Ho * Wo, embed_dim)             # free reshape, no copy


def _reference(x, conv_weight, conv_bias, ln_gamma, ln_beta, patch_size, eps=1e-5):
    """Pure-JAX reference matching PyTorch semantics."""
    y = jax.lax.conv_general_dilated(
        x.astype(jnp.float32), conv_weight.astype(jnp.float32),
        window_strides=(patch_size, patch_size), padding="VALID",
        dimension_numbers=("NCHW", "OIHW", "NCHW"))
    y = y + conv_bias.reshape(1, -1, 1, 1)
    B, E, Ho, Wo = y.shape
    y = y.reshape(B, E, Ho * Wo).transpose(0, 2, 1)   # (B, L, E)
    if ln_gamma is not None:
        mean = jnp.mean(y, axis=-1, keepdims=True)
        var = jnp.mean(jnp.square(y - mean), axis=-1, keepdims=True)
        y = (y - mean) * jax.lax.rsqrt(var + eps) * ln_gamma + ln_beta
    return y


if __name__ == "__main__":
    # Small config: img_size=16, patch_size=4, in_chans=4, embed_dim=32, batch=2.
    B, C, H, W = 2, 4, 16, 16
    patch_size = 4
    embed_dim = 32

    key = jax.random.PRNGKey(0)
    kx, kw, kb, kg = jax.random.split(key, 4)

    x = jax.random.normal(kx, (B, C, H, W), dtype=jnp.float32)
    conv_weight = 0.02 * jax.random.normal(
        kw, (embed_dim, C, patch_size, patch_size), dtype=jnp.float32)
    conv_bias = 0.01 * jax.random.normal(kb, (embed_dim,), dtype=jnp.float32)
    ln_gamma = 1.0 + 0.05 * jax.random.normal(kg, (embed_dim,), dtype=jnp.float32)
    ln_beta = jnp.zeros((embed_dim,), dtype=jnp.float32)

    # 1) LayerNorm path (Swin patch_norm=True)
    out = patch_embed(x, conv_weight, conv_bias, ln_gamma, ln_beta,
                      patch_size=patch_size)
    out = jax.block_until_ready(out)
    ref = _reference(x, conv_weight, conv_bias, ln_gamma, ln_beta, patch_size)
    assert out.shape == (B, (H // patch_size) * (W // patch_size), embed_dim)
    assert jnp.allclose(out, ref, atol=1e-4, rtol=1e-4), "norm path mismatch"

    # 2) norm_layer = None path (module default)
    out2 = patch_embed(x, conv_weight, conv_bias, None, None, patch_size=patch_size)
    out2 = jax.block_until_ready(out2)
    ref2 = _reference(x, conv_weight, conv_bias, None, None, patch_size)
    assert jnp.allclose(out2, ref2, atol=1e-4, rtol=1e-4), "no-norm path mismatch"

    # 3) Multi-step, exact-divisor grid: M = 8*8*8 = 512 rows, TM=128 -> 4 steps.
    B3, H3, W3 = 8, 32, 32
    x3 = jax.random.normal(jax.random.PRNGKey(1), (B3, C, H3, W3), dtype=jnp.float32)
    out3 = patch_embed(x3, conv_weight, conv_bias, ln_gamma, ln_beta,
                       patch_size=patch_size, tile_m=128)
    out3 = jax.block_until_ready(out3)
    ref3 = _reference(x3, conv_weight, conv_bias, ln_gamma, ln_beta, patch_size)
    assert jnp.allclose(out3, ref3, atol=1e-4, rtol=1e-4), "tiled path mismatch"

    # 4) Ragged tail (pad-free): M = 3*5*5 = 75 rows, TM=40 -> 2 steps, the
    #    last block reads/writes partially out of bounds and Pallas masks it.
    B4, H4, W4 = 3, 20, 20
    x4 = jax.random.normal(jax.random.PRNGKey(2), (B4, C, H4, W4), dtype=jnp.float32)
    out4 = patch_embed(x4, conv_weight, conv_bias, ln_gamma, ln_beta,
                       patch_size=patch_size, tile_m=40)
    out4 = jax.block_until_ready(out4)
    ref4 = _reference(x4, conv_weight, conv_bias, ln_gamma, ln_beta, patch_size)
    assert jnp.allclose(out4, ref4, atol=1e-4, rtol=1e-4), "ragged path mismatch"

    print("KERNEL_OK")
</pallas_src>

<mosaic_0001>
module attributes {stable_mosaic.version = 11 : i64} {
  func.func @_patch_embed_kernel_norm(%arg0: i32, %arg1: memref<32x64xf32, #tpu.memory_space<vmem>>, %arg2: memref<64x32xf32, #tpu.memory_space<vmem>>, %arg3: memref<1x32xf32, #tpu.memory_space<vmem>>, %arg4: memref<1x32xf32, #tpu.memory_space<vmem>>, %arg5: memref<1x32xf32, #tpu.memory_space<vmem>>, %arg6: memref<32x32xf32, #tpu.memory_space<vmem>>) attributes {dimension_semantics = [#tpu.dimension_semantics<parallel>], iteration_bounds = array<i64: 1>, scalar_prefetch = 0 : i64, scratch_operands = 0 : i64, tpu.core_type = #tpu.core_type<tc>, window_params = [{transform_indices = @transform_0, window_bounds = array<i64: 32, 64>}, {pipeline_mode = #tpu.pipeline_mode<synchronous>, transform_indices = @transform_1, window_bounds = array<i64: 64, 32>}, {pipeline_mode = #tpu.pipeline_mode<synchronous>, transform_indices = @transform_2, window_bounds = array<i64: 1, 32>}, {pipeline_mode = #tpu.pipeline_mode<synchronous>, transform_indices = @transform_3, window_bounds = array<i64: 1, 32>}, {pipeline_mode = #tpu.pipeline_mode<synchronous>, transform_indices = @transform_4, window_bounds = array<i64: 1, 32>}, {transform_indices = @transform_5, window_bounds = array<i64: 32, 32>}]} {
    %c0 = arith.constant 0 : index
    %c0_0 = arith.constant 0 : index
    %0 = vector.load %arg1[%c0, %c0_0] : memref<32x64xf32, #tpu.memory_space<vmem>>, vector<32x64xf32>
    %c0_1 = arith.constant 0 : index
    %c0_2 = arith.constant 0 : index
    %1 = vector.load %arg2[%c0_1, %c0_2] : memref<64x32xf32, #tpu.memory_space<vmem>>, vector<64x32xf32>
    %cst = arith.constant dense<0.000000e+00> : vector<32x32xf32>
    %2 = tpu.matmul %0, %1, %cst {dimension_numbers = #tpu.dot_dimension_numbers<[1], [0], [0], [1], [0, 0, 1, 1], [], []>} : vector<32x64xf32>, vector<64x32xf32>, vector<32x32xf32> -> vector<32x32xf32>
    %c0_3 = arith.constant 0 : index
    %c0_4 = arith.constant 0 : index
    %3 = vector.load %arg3[%c0_3, %c0_4] : memref<1x32xf32, #tpu.memory_space<vmem>>, vector<1x32xf32>
    %4 = vector.broadcast %3 : vector<1x32xf32> to vector<32x32xf32>
    %5 = arith.addf %2, %4 : vector<32x32xf32>
    %cst_5 = arith.constant dense<0.000000e+00> : vector<32xf32>
    %6 = vector.multi_reduction <add>, %5, %cst_5 [1] : vector<32x32xf32> to vector<32xf32>
    %7 = vector.shape_cast %6 : vector<32xf32> to vector<32x1xf32>
    %8 = arith.mulf %5, %5 : vector<32x32xf32>
    %cst_6 = arith.constant dense<0.000000e+00> : vector<32xf32>
    %9 = vector.multi_reduction <add>, %8, %cst_6 [1] : vector<32x32xf32> to vector<32xf32>
    %10 = vector.shape_cast %9 : vector<32xf32> to vector<32x1xf32>
    %cst_7 = arith.constant 3.125000e-02 : f32
    %11 = vector.broadcast %cst_7 : f32 to vector<32x1xf32>
    %12 = arith.mulf %7, %11 : vector<32x1xf32>
    %cst_8 = arith.constant 3.125000e-02 : f32
    %13 = vector.broadcast %cst_8 : f32 to vector<32x1xf32>
    %14 = arith.mulf %10, %13 : vector<32x1xf32>
    %15 = arith.mulf %12, %12 : vector<32x1xf32>
    %16 = arith.subf %14, %15 : vector<32x1xf32>
    %cst_9 = arith.constant 0.000000e+00 : f32
    %17 = vector.broadcast %cst_9 : f32 to vector<32x1xf32>
    %18 = arith.maximumf %16, %17 : vector<32x1xf32>
    %cst_10 = arith.constant 9.99999974E-6 : f32
    %19 = vector.broadcast %cst_10 : f32 to vector<32x1xf32>
    %20 = arith.addf %18, %19 : vector<32x1xf32>
    %21 = math.rsqrt %20 : vector<32x1xf32>
    %22 = vector.broadcast %12 : vector<32x1xf32> to vector<32x32xf32>
    %23 = arith.subf %5, %22 : vector<32x32xf32>
    %24 = vector.broadcast %21 : vector<32x1xf32> to vector<32x32xf32>
    %25 = arith.mulf %23, %24 : vector<32x32xf32>
    %c0_11 = arith.constant 0 : index
    %c0_12 = arith.constant 0 : index
    %26 = vector.load %arg4[%c0_11, %c0_12] : memref<1x32xf32, #tpu.memory_space<vmem>>, vector<1x32xf32>
    %27 = vector.broadcast %26 : vector<1x32xf32> to vector<32x32xf32>
    %28 = arith.mulf %25, %27 : vector<32x32xf32>
    %c0_13 = arith.constant 0 : index
    %c0_14 = arith.constant 0 : index
    %29 = vector.load %arg5[%c0_13, %c0_14] : memref<1x32xf32, #tpu.memory_space<vmem>>, vector<1x32xf32>
    %30 = vector.broadcast %29 : vector<1x32xf32> to vector<32x32xf32>
    %31 = arith.addf %28, %30 : vector<32x32xf32>
    %c0_15 = arith.constant 0 : index
    %c0_16 = arith.constant 0 : index
    %32 = vector.load %arg6[%c0_15, %c0_16] : memref<32x32xf32, #tpu.memory_space<vmem>>, vector<32x32xf32>
    tpu.vector_store %arg6[%c0_15, %c0_16], %31 {strides = array<i32>} : memref<32x32xf32, #tpu.memory_space<vmem>>, vector<32x32xf32>,
    return
  }
  func.func @transform_0(%arg0: i32) -> (i32, i32) {
    %c0_i32 = arith.constant 0 : i32
    %c0_i32_0 = arith.constant 0 : i32
    return %arg0, %c0_i32 : i32, i32
  }
  func.func @transform_1(%arg0: i32) -> (i32, i32) {
    %c0_i32 = arith.constant 0 : i32
    %c0_i32_0 = arith.constant 0 : i32
    %c0_i32_1 = arith.constant 0 : i32
    return %c0_i32, %c0_i32_0 : i32, i32
  }
  func.func @transform_2(%arg0: i32) -> (i32, i32) {
    %c0_i32 = arith.constant 0 : i32
    %c0_i32_0 = arith.constant 0 : i32
    %c0_i32_1 = arith.constant 0 : i32
    return %c0_i32, %c0_i32_0 : i32, i32
  }
  func.func @transform_3(%arg0: i32) -> (i32, i32) {
    %c0_i32 = arith.constant 0 : i32
    %c0_i32_0 = arith.constant 0 : i32
    %c0_i32_1 = arith.constant 0 : i32
    return %c0_i32, %c0_i32_0 : i32, i32
  }
  func.func @transform_4(%arg0: i32) -> (i32, i32) {
    %c0_i32 = arith.constant 0 : i32
    %c0_i32_0 = arith.constant 0 : i32
    %c0_i32_1 = arith.constant 0 : i32
    return %c0_i32, %c0_i32_0 : i32, i32
  }
  func.func @transform_5(%arg0: i32) -> (i32, i32) {
    %c0_i32 = arith.constant 0 : i32
    %c0_i32_0 = arith.constant 0 : i32
    return %arg0, %c0_i32 : i32, i32
  }
}

</mosaic_0001>

<bundles_post_ra>
// kernel: tpu_custom_call.1
= control target key start
LH: loop header
LB: loop body
LE: loop exit
PB: predicated region body
PF: predicated region fallthrough
CT: control target
= control target key end

     0   :  { %s413_s0 = inlined_call_operand.vmem [shape: f32[32,64], index: 0, kind: input, shape index: {}]   ;;  %s414_s1 = inlined_call_operand.vmem [shape: f32[64,32], index: 1, kind: input, shape index: {}]   ;;  %s415_s2 = inlined_call_operand.vmem [shape: f32[1,32], index: 2, kind: input, shape index: {}]   ;;  %s416_s3 = inlined_call_operand.vmem [shape: f32[1,32], index: 3, kind: input, shape index: {}]   ;;  %s417_s4 = inlined_call_operand.vmem [shape: f32[1,32], index: 4, kind: input, shape index: {}]   ;;  %s418_s5 = inlined_call_operand.hbm [shape: f32[32,32], index: 5, kind: output, shape index: {}]  }
   0x1   :  { %v32_v0 = vld [vmem:[%s414_s1 + $0x38] sm:$0xff]  ;;  %v31_v1 = vld [vmem:[%s414_s1 + $0x30] sm:$0xff]  ;;  %v30_v2 = vld [vmem:[%s414_s1 + $0x28] sm:$0xff] }
   0x2   :  { %58 = vmatpush.msra.mxu0 %v32_v0  ;;  %223 = vmatpush.msra.mxu2 %v32_v0  ;;  %v29_v3 = vld [vmem:[%s414_s1 + $0x20] sm:$0xff] }
   0x3   :  { %222 = vmatpush.msra.mxu1 %v32_v0  ;;  %224 = vmatpush.msra.mxu3 %v32_v0 }
   0x4   :  { %59 = vmatpush.msra.mxu0 %v31_v1  ;;  %226 = vmatpush.msra.mxu2 %v31_v1 }
   0x5   :  { %225 = vmatpush.msra.mxu1 %v31_v1  ;;  %227 = vmatpush.msra.mxu3 %v31_v1 }
   0x6   :  { %60 = vmatpush.msra.mxu0 %v30_v2  ;;  %229 = vmatpush.msra.mxu2 %v30_v2 }
   0x7   :  { %10 = vsyncpa [#allocation3], 0  ;;  %v28_v4 = vld [vmem:[%s414_s1 + $0x18] sm:$0xff]  ;;  %228 = vmatpush.msra.mxu1 %v30_v2  ;;  %230 = vmatpush.msra.mxu3 %v30_v2  ;;  %v27_v5 = vld [vmem:[%s414_s1 + $0x10] sm:$0xff]  ;;  %vm37_vm0 = vcmask 523264   ;;  %vm79_vm1 = vcmask 261120  }
   0x8   :  { %61 = vmatpush.msra.mxu0 %v29_v3  ;;  %232 = vmatpush.msra.mxu2 %v29_v3  ;;  %v26_v6 = vld [vmem:[%s414_s1 + $0x8] sm:$0xff]  ;;  %v25_v7 = vld [vmem:[%s414_s1] sm:$0xff]  ;;  %v23_v9 = vld [vmem:[%s413_s0 + $0x10] sm:$0xff]  ;;  %s206_s22 = sshll.u32 %s418_s5, 4  ;;  %s287_s23 = smov 128   ;;  %s207_s22 = int_to_ptr.hbm [resolvable:$true] %s206_s22 }
   0x9   :  { %231 = vmatpush.msra.mxu1 %v29_v3  ;;  %233 = vmatpush.msra.mxu3 %v29_v3  ;;  %v21_v8 = vld [vmem:[%s413_s0] sm:$0xff]  ;;  %v22_v10 = vld [vmem:[%s413_s0 + $0x8] sm:$0xff]  ;;  %v24_v11 = vld [vmem:[%s413_s0 + $0x18] sm:$0xff]  ;;  %s288_s24 = smov 8  }
   0xa   :  { %62 = vmatpush.msra.mxu0 %v28_v4  ;;  %235 = vmatpush.msra.mxu2 %v28_v4  ;;  %v249_v12 = vld [vmem:[%s415_s2] ss:$0 sm:$0xff] }
   0xb   :  { %234 = vmatpush.msra.mxu1 %v28_v4  ;;  %236 = vmatpush.msra.mxu3 %v28_v4 }
   0xc   :  { %63 = vmatpush.msra.mxu0 %v27_v5  ;;  %238 = vmatpush.msra.mxu2 %v27_v5 }
   0xd   :  { %237 = vmatpush.msra.mxu1 %v27_v5  ;;  %239 = vmatpush.msra.mxu3 %v27_v5 }
   0xe   :  { %64 = vmatpush.msra.mxu0 %v26_v6  ;;  %241 = vmatpush.msra.mxu2 %v26_v6 }
   0xf   :  { %240 = vmatpush.msra.mxu1 %v26_v6  ;;  %242 = vmatpush.msra.mxu3 %v26_v6 }
  0x10   :  { %65 = vmatpush.msra.mxu0 %v25_v7  ;;  %244 = vmatpush.msra.mxu2 %v25_v7 }
  0x11   :  { %218 = vmatmul.msk.f32.vlgmr.msra.gmra.mxu0 %vm37_vm0, %v21_v8  ;;  %220 = vmatmul.msk.f32.vlgmr.msra.gmra.mxu2 %vm37_vm0, %v23_v9 }
  0x12   :  { %243 = vmatpush.msra.mxu1 %v25_v7  ;;  %245 = vmatpush.msra.mxu3 %v25_v7  ;;  %v250_v7 = vld [vmem:[%s416_s3] ss:$0 sm:$0xff]  ;;  %s286_s3 = smov [#allocation2]  }
  0x13   :  { %219 = vmatmul.msk.f32.vlgmr.msra.gmra.mxu1 %vm37_vm0, %v22_v10  ;;  %221 = vmatmul.msk.f32.vlgmr.msra.gmra.mxu3 %vm37_vm0, %v24_v11  ;;  %v251_v11 = vld [vmem:[%s417_s4] ss:$0 sm:$0xff]  ;;  %s204_s4 = sshll.u32 %s286_s3, 4  ;;  %s205_s4 = int_to_ptr.vmem [resolvable:$true] %s204_s4 }
  0x8e   :  { %v67_v13 = vpop.f32.mrf.mxu0 }
  0x8f   :  { %v358_v14 = vadd.f32 %v249_v12, %v67_v13 }
  0x90   :  { %v70_v15 = vpop.f32.mrf.mxu1 }
  0x91   :  { %v80_v16 = vsel %vm79_vm1, %v358_v14, 0.0  ;;  %v92_v17 = vmul.f32 %v358_v14, %v358_v14  ;;  %v364_v18 = vadd.f32 %v249_v12, %v70_v15 }
  0x92   :  { %81 = vadd.xlane.f32.xlu0 %v80_v16 }
  0x93   :  { %v96_v19 = vsel %vm79_vm1, %v92_v17, 0.0  ;;  %v93_v22 = vmul.f32 %v364_v18, %v364_v18  ;;  %v83_v25 = vsel %vm79_vm1, %v364_v18, 0.0 }
  0x94   :  { %v73_v20 = vpop.f32.mrf.mxu2  ;;  %97 = vadd.xlane.f32.xlu2 %v96_v19 }
  0x95   :  { %v367_v21 = vadd.f32 %v249_v12, %v73_v20  ;;  %v99_v27 = vsel %vm79_vm1, %v93_v22, 0.0 }
  0x96   :  { %v76_v23 = vpop.f32.mrf.mxu3 }
  0x97   :  { %v86_v24 = vsel %vm79_vm1, %v367_v21, 0.0  ;;  %v375_v26 = vadd.f32 %v249_v12, %v76_v23  ;;  %v94_v29 = vmul.f32 %v367_v21, %v367_v21 }
  0x98   :  { %87 = vadd.xlane.f32.xlu1 %v86_v24 }
  0x99   :  { %v89_v28 = vsel %vm79_vm1, %v375_v26, 0.0  ;;  %v102_v30 = vsel %vm79_vm1, %v94_v29, 0.0  ;;  %v95_v31 = vmul.f32 %v375_v26, %v375_v26 }
  0x9a   :  { %84 = vadd.xlane.f32.xlu0 %v83_v25 }
  0x9b   :  { %v105_v32 = vsel %vm79_vm1, %v95_v31, 0.0 }
  0x9c   :  { %100 = vadd.xlane.f32.xlu2 %v99_v27 }
  0xa0   :  { %90 = vadd.xlane.f32.xlu1 %v89_v28 }
  0xa2   :  { %103 = vadd.xlane.f32.xlu0 %v102_v30 }
  0xa8   :  { %106 = vadd.xlane.f32.xlu1 %v105_v32 }
 0x105   :  { %v82_v33 = vpop.xlane.xlu0 %81 }
 0x106   :  { %v108_v34 = vmul.f32 0.03125, %v82_v33 }
 0x107   :  { %v98_v35 = vpop.xlane.xlu2 %97 }
 0x108   :  { %v116_v36 = vmul.f32 %v108_v34, %v108_v34  ;;  %v112_v37 = vmul.f32 0.03125, %v98_v35  ;;  %v172_v6 = vsub.f32 %v358_v14, %v108_v34 }
 0x10a   :  { %v120_v38 = vsub.f32 %v112_v37, %v116_v36 }
 0x10b   :  { %v88_v39 = vpop.xlane.xlu1 %87 }
 0x10c   :  { %v124_v40 = vmax.f32 %v120_v38, 0.0  ;;  %v386_v47 = vmul.f32 0.03125, %v88_v39 }
 0x10d   :  { %v85_v41 = vpop.xlane.xlu0 %84 }
 0x10e   :  { %v128_v42 = vadd.f32 1e-05, %v124_v40  ;;  %v109_v43 = vmul.f32 0.03125, %v85_v41  ;;  %v118_v53 = vmul.f32 %v386_v47, %v386_v47  ;;  %v174_v36 = vsub.f32 %v367_v21, %v386_v47 }
 0x10f   :  { %v101_v44 = vpop.xlane.xlu2 %100 }
 0x110   :  { %252 = vrsqrt.f32 %v128_v42  ;;  %v117_v45 = vmul.f32 %v109_v43, %v109_v43  ;;  %v113_v46 = vmul.f32 0.03125, %v101_v44  ;;  %vm138_vm2 = vweird.f32 %v128_v42 }
 0x111   :  { %v173_v25 = vsub.f32 %v364_v18, %v109_v43 }
 0x112   :  { %v121_v48 = vsub.f32 %v113_v46, %v117_v45 }
 0x113   :  { %v91_v49 = vpop.xlane.xlu1 %90 }
 0x114   :  { %v125_v50 = vmax.f32 %v121_v48, 0.0  ;;  %v390_v57 = vmul.f32 0.03125, %v91_v49 }
 0x115   :  { %v104_v51 = vpop.xlane.xlu0 %103 }
 0x116   :  { %v253_v52 = vpop.eup %252  ;;  %v114_v54 = vmul.f32 0.03125, %v104_v51  ;;  %v129_v56 = vadd.f32 1e-05, %v125_v50  ;;  %v119_v63 = vmul.f32 %v390_v57, %v390_v57  ;;  %v175_v43 = vsub.f32 %v375_v26, %v390_v57 }
 0x117   :  { %v133_v55 = vmul.f32 %v253_v52, %v128_v42  ;;  %vm139_vm3 = vweird.f32 %v253_v52 }
 0x118   :  { %v122_v58 = vsub.f32 %v114_v54, %v118_v53  ;;  %254 = vrsqrt.f32 %v129_v56  ;;  %vm140_vm4 = vmor %vm138_vm2, %vm139_vm3  ;;  %vm148_vm5 = vweird.f32 %v129_v56 }
 0x119   :  { %v134_v59 = vmul.f32 %v253_v52, %v133_v55 }
 0x11a   :  { %v126_v60 = vmax.f32 %v122_v58, 0.0 }
 0x11b   :  { %v135_v61 = vmul.f32 0.5, %v134_v59  ;;  %v107_v62 = vpop.xlane.xlu1 %106 }
 0x11c   :  { %v130_v0 = vadd.f32 1e-05, %v126_v60  ;;  %v115_v1 = vmul.f32 0.03125, %v107_v62 }
 0x11d   :  { %v136_v2 = vsub.f32 1.5, %v135_v61 }
 0x11e   :  { %256 = vrsqrt.f32 %v130_v0  ;;  %v123_v3 = vsub.f32 %v115_v1, %v119_v63  ;;  %v255_v4 = vpop.eup %254  ;;  %vm158_vm9 = vweird.f32 %v130_v0 }
 0x11f   :  { %v137_v5 = vmul.f32 %v253_v52, %v136_v2  ;;  %v143_v8 = vmul.f32 %v255_v4, %v129_v56  ;;  %vm149_vm6 = vweird.f32 %v255_v4 }
 0x120   :  { %v127_v9 = vmax.f32 %v123_v3, 0.0  ;;  %vm150_vm7 = vmor %vm148_vm5, %vm149_vm6 }
 0x121   :  { %v141_v10 = vsel %vm140_vm4, %v253_v52, %v137_v5  ;;  %v144_v13 = vmul.f32 %v255_v4, %v143_v8 }
 0x122   :  { %v176_v12 = vmul.f32 %v172_v6, %v141_v10  ;;  %v131_v15 = vadd.f32 1e-05, %v127_v9 }
 0x123   :  { %v145_v19 = vmul.f32 0.5, %v144_v13 }
 0x124   :  { %v257_v16 = vpop.eup %256  ;;  %v184_v17 = vmul.f32 %v250_v7, %v176_v12  ;;  %258 = vrsqrt.f32 %v131_v15  ;;  %vm168_vm12 = vweird.f32 %v131_v15 }
 0x125   :  { %v153_v14 = vmul.f32 %v257_v16, %v130_v0  ;;  %v146_v22 = vsub.f32 1.5, %v145_v19  ;;  %vm159_vm8 = vweird.f32 %v257_v16 }
 0x126   :  { %v192_v20 = vadd.f32 %v251_v11, %v184_v17  ;;  %vm160_vm10 = vmor %vm158_vm9, %vm159_vm8 }
 0x127   :  { %v154_v23 = vmul.f32 %v257_v16, %v153_v14  ;;  %v147_v24 = vmul.f32 %v255_v4, %v146_v22 }
 0x128   :  { %196 = vst.msk [vmem:[#allocation2] sm:$0xff] %vm79_vm1, %v192_v20 }
 0x129   :  { %v155_v27 = vmul.f32 0.5, %v154_v23  ;;  %v151_v29 = vsel %vm150_vm7, %v255_v4, %v147_v24 }
 0x12a   :  { %v259_v28 = vpop.eup %258  ;;  %v177_v30 = vmul.f32 %v173_v25, %v151_v29 }
 0x12b   :  { %v156_v31 = vsub.f32 1.5, %v155_v27  ;;  %v163_v32 = vmul.f32 %v259_v28, %v131_v15  ;;  %vm169_vm11 = vweird.f32 %v259_v28 }
 0x12c   :  { %v185_v33 = vmul.f32 %v250_v7, %v177_v30  ;;  %vm170_vm13 = vmor %vm168_vm12, %vm169_vm11 }
 0x12d   :  { %v157_v34 = vmul.f32 %v257_v16, %v156_v31  ;;  %v164_v35 = vmul.f32 %v259_v28, %v163_v32 }
 0x12e   :  { %v193_v37 = vadd.f32 %v251_v11, %v185_v33 }
 0x12f   :  { %v161_v38 = vsel %vm160_vm10, %v257_v16, %v157_v34  ;;  %v165_v39 = vmul.f32 0.5, %v164_v35 }
 0x130   :  { %v178_v18 = vmul.f32 %v174_v36, %v161_v38  ;;  %197 = vst.msk [vmem:[#allocation2 + $0x8] sm:$0xff] %vm79_vm1, %v193_v37 }
 0x131   :  { %v166_v40 = vsub.f32 1.5, %v165_v39 }
 0x132   :  { %v186_v41 = vmul.f32 %v250_v7, %v178_v18 }
 0x133   :  { %v167_v42 = vmul.f32 %v259_v28, %v166_v40 }
 0x134   :  { %v194_v44 = vadd.f32 %v251_v11, %v186_v41 }
 0x135   :  { %v171_v45 = vsel %vm170_vm13, %v259_v28, %v167_v42 }
 0x136   :  { %198 = vst.msk [vmem:[#allocation2 + $0x10] sm:$0xff] %vm79_vm1, %v194_v44  ;;  %v179_v21 = vmul.f32 %v175_v43, %v171_v45 }
 0x138   :  { %v187_v46 = vmul.f32 %v250_v7, %v179_v21 }
 0x13a   :  { %v195_v47 = vadd.f32 %v251_v11, %v187_v46 }
 0x13c   :  { %199 = vst.msk [vmem:[#allocation2 + $0x18] sm:$0xff] %vm79_vm1, %v195_v47 }
 0x13d   :  { %212 = dma.vmem_to_hbm [thread:$0]  %s205_s4, 512, %s207_s22, [#allocation3], %s287_s23, %s287_s23, %s288_s24  }
 0x13e   :  { %284 = dma.done.wait [#allocation3], 512  }
 0x13f   :  { %285 = vsyncadd [#allocation3], 4294966784 }
 0x140   :  { %217 = vsyncpa [#allocation3], 1 }

</bundles_post_ra>
